<compile_context>
chip_gen: v7x
topology: tpu7x:2x2x1
jax: 0.10.0
libtpu: 0.0.40
codegen_flags: <defaults>
</compile_context>

<pallas_src>
import functools
import math

import jax
import jax.numpy as jnp
from jax import lax
from jax.experimental import pallas as pl
from jax.experimental.pallas import tpu as pltpu

# ShrinkageLoss hyperparameters (deterministic, in-script).
SHRINK_A = 10.0
SHRINK_C = 0.2

_LANES = 128
_SUBLANES = 8
_SUB_ROWS = 1024        # strip-mine granularity inside the kernel (rows)
_MAX_TILE_ROWS = 8192   # 8192 x 128 x 4B = 4 MiB per f32 input block


def _tile_loss_sum(x, t, clip):
    """ShrinkageLoss + clamp on one (rows, 128) tile, partially reduced to (8, 128)."""
    x = x.astype(jnp.float32)
    t = t.astype(jnp.float32)
    l = jnp.abs(x - t)
    e = jnp.exp(SHRINK_A * (SHRINK_C - l))                      # EUP
    loss = (l * l) * pl.reciprocal(1.0 + e, approx=False)       # no f32 divide
    loss = jnp.maximum(loss, jnp.float32(clip))                 # torch.clamp(loss, clip)
    rows = loss.shape[0]
    # (rows,128) -> (rows//8, 8, 128), sum over the leading axis: pure VPU vreg adds.
    return loss.reshape(rows // _SUBLANES, _SUBLANES, _LANES).sum(axis=0)


def _clipped_shrinkage_kernel(x_ref, t_ref, acc_ref, *, clip: float, sub: int, n_sub: int):
    i = pl.program_id(1)   # sequential reduction axis

    @pl.when(i == 0)
    def _init():
        acc_ref[...] = jnp.zeros_like(acc_ref)

    if n_sub == 1:
        acc_ref[...] += _tile_loss_sum(x_ref[...], t_ref[...], clip)
    else:
        # Strip-mine: keep the big DMA block but bound live f32 intermediates to
        # `sub` rows, accumulating into one (8,128) vreg carry.
        def body(j, acc):
            r0 = pl.multiple_of(j * sub, _SUBLANES)
            return acc + _tile_loss_sum(x_ref[pl.ds(r0, sub), :],
                                        t_ref[pl.ds(r0, sub), :], clip)

        acc_ref[...] += lax.fori_loop(
            0, n_sub, body, jnp.zeros((_SUBLANES, _LANES), jnp.float32))


def _shrinkage_clip_sum_jax(x, t, clip):
    """Plain-JAX sum of the clipped shrinkage loss (for the small ragged remainder)."""
    x = x.astype(jnp.float32)
    t = t.astype(jnp.float32)
    l = jnp.abs(x - t)
    loss = (l * l) / (1.0 + jnp.exp(SHRINK_A * (SHRINK_C - l)))
    loss = jnp.maximum(loss, jnp.float32(clip))
    return jnp.sum(loss, dtype=jnp.float32)


def loss_precision_clipper(inp: jax.Array, target: jax.Array, *,
                           clip: float, reduction: str = "mean") -> jax.Array:
    """Pallas implementation of LossPrecissionClipper(ShrinkageLoss, clip, reduction)."""
    assert inp.shape == target.shape
    total_n = math.prod(inp.shape)

    x = inp.reshape(-1)
    t = target.reshape(-1)

    rows_all = total_n // _LANES
    tm = 0
    if rows_all >= _SUBLANES:
        tm = min(_MAX_TILE_ROWS, (rows_all // _SUBLANES) * _SUBLANES)
        if tm >= _SUB_ROWS:
            tm = (tm // _SUB_ROWS) * _SUB_ROWS   # make tm a multiple of the sub-chunk

    partial_sum = jnp.float32(0.0)
    main_elems = 0

    if tm > 0:
        n_blocks = rows_all // tm
        main_rows = n_blocks * tm
        main_elems = main_rows * _LANES

        # Expose a 2-way parallel axis when the block count splits evenly.
        n_outer = 2 if (n_blocks >= 2 and n_blocks % 2 == 0) else 1
        n_inner = n_blocks // n_outer

        # Zero-copy 2-D view whenever possible (reshape of contiguous data is a
        # bitcast). The grid only covers the first n_blocks blocks, so extra rows
        # in the view are simply never DMA'd.
        if main_elems == total_n:
            x2 = x.reshape(main_rows, _LANES)
            t2 = t.reshape(main_rows, _LANES)
        elif total_n % _LANES == 0:
            x2 = x.reshape(rows_all, _LANES)
            t2 = t.reshape(rows_all, _LANES)
        else:
            # Rare (total_n not a multiple of 128): one prefix slice copy.
            x2 = x[:main_elems].reshape(main_rows, _LANES)
            t2 = t[:main_elems].reshape(main_rows, _LANES)

        sub = tm if tm < _SUB_ROWS else _SUB_ROWS
        n_sub = tm // sub

        kernel = functools.partial(
            _clipped_shrinkage_kernel, clip=float(clip), sub=sub, n_sub=n_sub)

        itemsize = jnp.dtype(inp.dtype).itemsize
        block_bytes = tm * _LANES * itemsize
        # 2 inputs x 2 pipeline buffers + headroom for the strip-mined intermediates.
        vmem_limit = int(min(56 * 2**20, max(32 * 2**20, 4 * block_bytes + 12 * 2**20)))

        partials = pl.pallas_call(
            kernel,
            out_shape=jax.ShapeDtypeStruct((n_outer, _SUBLANES, _LANES), jnp.float32),
            grid_spec=pltpu.PrefetchScalarGridSpec(
                num_scalar_prefetch=0,
                grid=(n_outer, n_inner),
                in_specs=[
                    pl.BlockSpec((tm, _LANES), lambda o, i: (o * n_inner + i, 0)),
                    pl.BlockSpec((tm, _LANES), lambda o, i: (o * n_inner + i, 0)),
                ],
                # Per-outer-block (8,128) partial-sum accumulator, resident across
                # the inner (reduction) axis.
                out_specs=pl.BlockSpec((None, _SUBLANES, _LANES), lambda o, i: (o, 0, 0)),
            ),
            compiler_params=pltpu.CompilerParams(
                dimension_semantics=("parallel", "arbitrary"),
                vmem_limit_bytes=vmem_limit,
            ),
            cost_estimate=pl.CostEstimate(
                flops=6 * main_elems,
                transcendentals=main_elems,
                bytes_accessed=2 * main_elems * itemsize + n_outer * _SUBLANES * _LANES * 4,
            ),
        )(x2, t2)
        partial_sum = jnp.sum(partials, dtype=jnp.float32)

    # Ragged remainder (< one block, often zero): plain JAX, added to the total.
    rem = total_n - main_elems
    if rem > 0:
        partial_sum = partial_sum + _shrinkage_clip_sum_jax(x[main_elems:], t[main_elems:], clip)

    if reduction == "mean":
        return partial_sum / jnp.float32(total_n)
    if reduction == "sum":
        return partial_sum
    # TODO(synk): reduction='none' (full unreduced loss tensor output) is a trivial
    # variant (write the loss tile instead of accumulating); only 'mean'/'sum' here.
    raise NotImplementedError(reduction)


def _reference(inp, target, clip):
    l = jnp.abs(inp - target)
    loss = (l * l) / (1.0 + jnp.exp(SHRINK_A * (SHRINK_C - l)))
    loss = jnp.maximum(loss, clip)
    return jnp.mean(loss)


if __name__ == "__main__":
    key = jax.random.PRNGKey(0)
    k1, k2 = jax.random.split(key)

    # NCHW, matching the PyTorch convention for the module's inputs.
    inp = jax.random.normal(k1, (2, 4, 16, 16), dtype=jnp.float32)
    target = jax.random.normal(k2, (2, 4, 16, 16), dtype=jnp.float32)
    clip = 0.05

    out = loss_precision_clipper(inp, target, clip=clip, reduction="mean")
    out = jax.block_until_ready(out)

    ref = _reference(inp, target, clip)
    assert jnp.allclose(out, ref, rtol=1e-5, atol=1e-6), (out, ref)

    print("KERNEL_OK")
</pallas_src>

<mosaic_0001>
module attributes {stable_mosaic.version = 11 : i64} {
  func.func @_clipped_shrinkage_kernel(%arg0: i32, %arg1: i32, %arg2: memref<16x128xf32, #tpu.memory_space<vmem>>, %arg3: memref<16x128xf32, #tpu.memory_space<vmem>>, %arg4: memref<1x8x128xf32, #tpu.memory_space<vmem>>) attributes {dimension_semantics = [#tpu.dimension_semantics<parallel>, #tpu.dimension_semantics<arbitrary>], iteration_bounds = array<i64: 1, 1>, scalar_prefetch = 0 : i64, scratch_operands = 0 : i64, tpu.core_type = #tpu.core_type<tc>, window_params = [{transform_indices = @transform_0, window_bounds = array<i64: 16, 128>}, {transform_indices = @transform_1, window_bounds = array<i64: 16, 128>}, {transform_indices = @transform_2, window_bounds = array<i64: 1, 8, 128>}]} {
    %c0_i32 = arith.constant 0 : i32
    %0 = arith.cmpi eq, %arg1, %c0_i32 : i32
    %1 = arith.extui %0 : i1 to i32
    %c0_i32_0 = arith.constant 0 : i32
    %2 = arith.cmpi ne, %1, %c0_i32_0 : i32
    scf.if %2 {
      %cst_14 = arith.constant 0.000000e+00 : f32
      %27 = vector.broadcast %cst_14 : f32 to vector<8x128xf32>
      %c0_15 = arith.constant 0 : index
      %c0_16 = arith.constant 0 : index
      %c0_17 = arith.constant 0 : index
      %28 = vector.load %arg4[%c0_15, %c0_16, %c0_17] : memref<1x8x128xf32, #tpu.memory_space<vmem>>, vector<1x8x128xf32>
      %29 = vector.shape_cast %28 : vector<1x8x128xf32> to vector<8x128xf32>
      %30 = vector.shape_cast %27 : vector<8x128xf32> to vector<1x8x128xf32>
      tpu.vector_store %arg4[%c0_15, %c0_16, %c0_17], %30 {strides = array<i32>} : memref<1x8x128xf32, #tpu.memory_space<vmem>>, vector<1x8x128xf32>,
    } else {
    }
    %c0 = arith.constant 0 : index
    %c0_1 = arith.constant 0 : index
    %c0_2 = arith.constant 0 : index
    %3 = vector.load %arg4[%c0, %c0_1, %c0_2] : memref<1x8x128xf32, #tpu.memory_space<vmem>>, vector<1x8x128xf32>
    %4 = vector.shape_cast %3 : vector<1x8x128xf32> to vector<8x128xf32>
    %c0_3 = arith.constant 0 : index
    %c0_4 = arith.constant 0 : index
    %5 = vector.load %arg2[%c0_3, %c0_4] : memref<16x128xf32, #tpu.memory_space<vmem>>, vector<16x128xf32>
    %c0_5 = arith.constant 0 : index
    %c0_6 = arith.constant 0 : index
    %6 = vector.load %arg3[%c0_5, %c0_6] : memref<16x128xf32, #tpu.memory_space<vmem>>, vector<16x128xf32>
    %7 = arith.subf %5, %6 : vector<16x128xf32>
    %8 = math.absf %7 : vector<16x128xf32>
    %cst = arith.constant 2.000000e-01 : f32
    %9 = vector.broadcast %cst : f32 to vector<16x128xf32>
    %10 = arith.subf %9, %8 : vector<16x128xf32>
    %cst_7 = arith.constant 1.000000e+01 : f32
    %11 = vector.broadcast %cst_7 : f32 to vector<16x128xf32>
    %12 = arith.mulf %11, %10 : vector<16x128xf32>
    %13 = math.exp %12 : vector<16x128xf32>
    %14 = arith.mulf %8, %8 : vector<16x128xf32>
    %cst_8 = arith.constant 1.000000e+00 : f32
    %15 = vector.broadcast %cst_8 : f32 to vector<16x128xf32>
    %16 = arith.addf %15, %13 : vector<16x128xf32>
    %17 = tpu.reciprocal %16 : vector<16x128xf32> -> vector<16x128xf32>
    %18 = arith.mulf %14, %17 : vector<16x128xf32>
    %cst_9 = arith.constant 5.000000e-02 : f32
    %19 = vector.broadcast %cst_9 : f32 to vector<16x128xf32>
    %20 = arith.maximumf %18, %19 : vector<16x128xf32>
    %21 = vector.shape_cast %20 : vector<16x128xf32> to vector<2x8x128xf32>
    %cst_10 = arith.constant dense<0.000000e+00> : vector<8x128xf32>
    %22 = vector.multi_reduction <add>, %21, %cst_10 [0] : vector<2x8x128xf32> to vector<8x128xf32>
    %23 = arith.addf %4, %22 : vector<8x128xf32>
    %c0_11 = arith.constant 0 : index
    %c0_12 = arith.constant 0 : index
    %c0_13 = arith.constant 0 : index
    %24 = vector.load %arg4[%c0_11, %c0_12, %c0_13] : memref<1x8x128xf32, #tpu.memory_space<vmem>>, vector<1x8x128xf32>
    %25 = vector.shape_cast %24 : vector<1x8x128xf32> to vector<8x128xf32>
    %26 = vector.shape_cast %23 : vector<8x128xf32> to vector<1x8x128xf32>
    tpu.vector_store %arg4[%c0_11, %c0_12, %c0_13], %26 {strides = array<i32>} : memref<1x8x128xf32, #tpu.memory_space<vmem>>, vector<1x8x128xf32>,
    return
  }
  func.func @transform_0(%arg0: i32, %arg1: i32) -> (i32, i32) {
    %c1_i32 = arith.constant 1 : i32
    %0 = arith.muli %arg0, %c1_i32 : i32
    %1 = arith.addi %0, %arg1 : i32
    %c0_i32 = arith.constant 0 : i32
    %c0_i32_0 = arith.constant 0 : i32
    return %1, %c0_i32 : i32, i32
  }
  func.func @transform_1(%arg0: i32, %arg1: i32) -> (i32, i32) {
    %c1_i32 = arith.constant 1 : i32
    %0 = arith.muli %arg0, %c1_i32 : i32
    %1 = arith.addi %0, %arg1 : i32
    %c0_i32 = arith.constant 0 : i32
    %c0_i32_0 = arith.constant 0 : i32
    return %1, %c0_i32 : i32, i32
  }
  func.func @transform_2(%arg0: i32, %arg1: i32) -> (i32, i32, i32) {
    %c0_i32 = arith.constant 0 : i32
    %c0_i32_0 = arith.constant 0 : i32
    %c0_i32_1 = arith.constant 0 : i32
    return %arg0, %c0_i32, %c0_i32_0 : i32, i32, i32
  }
}

</mosaic_0001>

<bundles_post_ra>
// kernel: tpu_custom_call.1
= control target key start
LH: loop header
LB: loop body
LE: loop exit
PB: predicated region body
PF: predicated region fallthrough
CT: control target
= control target key end

     0   :  { %7 = vsyncpa [#allocation3], 0  ;;  %s245_s0 = inlined_call_operand.hbm [shape: f32[16,128], index: 0, kind: input, shape index: {}]   ;;  %s246_s1 = inlined_call_operand.hbm [shape: f32[16,128], index: 1, kind: input, shape index: {}]   ;;  %s247_s2 = inlined_call_operand.hbm [shape: f32[1,8,128], index: 2, kind: output, shape index: {}]  }
   0x1   :  { %8 = vsyncpa [#allocation6], 0 }
   0x2   :  { %9 = vsyncpa [#allocation4], 0  ;;  %s189_s9 = smov [#allocation2]   ;;  %s117_s13 = scalar_lea.hbm %s245_s0, 256 }
   0x3   :  { %s19_s10 = sshll.u32 %s189_s9, 4  ;;  %p118_p0 = scmp.ne.s32.totalorder %s245_s0, %s117_s13  ;;  %s20_s10 = int_to_ptr.vmem [resolvable:$true] %s19_s10 }
   0x4   :  { %p121_p1 = scmp.lt.u32.totalorder %s117_s13, %s245_s0 }
   0x6   :  { %p123_p2 = pnand %p121_p1, %p118_p0 }
   0x8   :  { %126 = shalt.err (!%p123_p2)
}
   0x9   :  { %s127_s18 = scalar_lea.vmem %s20_s10, 256  ;;  %p132_p4 = scmp.lt.s32.totalorder %s20_s10, %s20_s10 }
   0xa   :  { %p128_p3 = scmp.ne.s32.totalorder %s20_s10, %s127_s18  ;;  %p133_p5 = scmp.lt.s32.totalorder %s127_s18, %s127_s18 }
   0xc   :  { %p134_p6 = por %p133_p5, %p132_p4 }
   0xe   :  { %p135_p7 = pnand %p134_p6, %p128_p3 }
  0x10   :  { %138 = shalt.err (!%p135_p7)
}
  0x11   :  { %s190_s19 = smov 128   ;;  %s191_s20 = smov 8  }
  0x12   :  { %25 = dma.hbm_to_vmem [thread:$0]  %s245_s0, 256, %s20_s10, [#allocation3], %s190_s19, %s190_s19, %s191_s20  }
  0x13   :  { %s192_s23 = smov [#allocation5]   ;;  %s139_s27 = scalar_lea.hbm %s246_s1, 256 }
  0x14   :  { %s35_s24 = sshll.u32 %s192_s23, 4  ;;  %p140_p8 = scmp.ne.s32.totalorder %s246_s1, %s139_s27  ;;  %s36_s24 = int_to_ptr.vmem [resolvable:$true] %s35_s24 }
  0x15   :  { %p143_p9 = scmp.lt.u32.totalorder %s139_s27, %s246_s1 }
  0x17   :  { %p145_p10 = pnand %p143_p9, %p140_p8 }
  0x19   :  { %148 = shalt.err (!%p145_p10)
}
  0x1a   :  { %s149_s4 = scalar_lea.vmem %s36_s24, 256  ;;  %p154_p12 = scmp.lt.s32.totalorder %s36_s24, %s36_s24 }
  0x1b   :  { %p150_p11 = scmp.ne.s32.totalorder %s36_s24, %s149_s4  ;;  %p155_p13 = scmp.lt.s32.totalorder %s149_s4, %s149_s4 }
  0x1d   :  { %p156_p0 = por %p155_p13, %p154_p12 }
  0x1f   :  { %p157_p1 = pnand %p156_p0, %p150_p11 }
  0x21   :  { %160 = shalt.err (!%p157_p1)
}
  0x22   :  { %41 = dma.hbm_to_vmem [thread:$0]  %s246_s1, 256, %s36_s24, [#allocation6], %s190_s19, %s190_s19, %s191_s20  }
  0x23   :  { %183 = dma.done.wait [#allocation3], 256  }
  0x24   :  { %184 = vsyncadd [#allocation3], 4294967040 }
  0x25   :  { %185 = dma.done.wait [#allocation6], 256  }
  0x26   :  { %186 = vsyncadd [#allocation6], 4294967040  ;;  %v58_v0 = vld [vmem:[#allocation2] sm:$0xff]  ;;  %v59_v1 = vld [vmem:[#allocation2 + $0x8] sm:$0xff]  ;;  %s193_s1 = smov [#allocation7]  }
  0x27   :  { %v60_v2 = vld [vmem:[#allocation5] sm:$0xff]  ;;  %v61_v3 = vld [vmem:[#allocation5 + $0x8] sm:$0xff]  ;;  %s93_s6 = sshll.u32 %s193_s1, 4  ;;  %s94_s6 = int_to_ptr.vmem [resolvable:$true] %s93_s6 }
  0x28   :  { %v62_v4 = vsub.f32 %v58_v0, %v60_v2  ;;  %v63_v5 = vsub.f32 %v59_v1, %v61_v3  ;;  %s161_s7 = scalar_lea.vmem %s94_s6, 128  ;;  %p166_p3 = scmp.lt.s32.totalorder %s94_s6, %s94_s6 }
  0x29   :  { %p162_p2 = scmp.ne.s32.totalorder %s94_s6, %s161_s7  ;;  %p167_p4 = scmp.lt.s32.totalorder %s161_s7, %s161_s7 }
  0x2a   :  { %v64_v6 = vand.u32 2147483647, %v62_v4  ;;  %v65_v7 = vand.u32 2147483647, %v63_v5 }
  0x2b   :  { %p168_p5 = por %p167_p4, %p166_p3 }
  0x2c   :  { %v66_v8 = vsub.f32 0.2, %v64_v6  ;;  %v67_v9 = vsub.f32 0.2, %v65_v7  ;;  %v74_v18 = vmul.f32 %v64_v6, %v64_v6  ;;  %v75_v19 = vmul.f32 %v65_v7, %v65_v7 }
  0x2d   :  { %p169_p6 = pnand %p168_p5, %p162_p2 }
  0x2e   :  { %v68_v10 = vmul.f32 10.0, %v66_v8  ;;  %v69_v11 = vmul.f32 10.0, %v67_v9 }
  0x30   :  { %v70_v12 = vmul.f32 1.442695, %v68_v10  ;;  %v72_v13 = vmul.f32 1.442695, %v69_v11 }
  0x32   :  { %109 = vpow2.f32 %v70_v12 }
  0x33   :  { %111 = vpow2.f32 %v72_v13 }
  0x3c   :  { %v110_v14 = vpop.eup %109 }
  0x3d   :  { %v112_v15 = vpop.eup %111  ;;  %v76_v16 = vadd.f32 1.0, %v110_v14 }
  0x3e   :  { %v77_v17 = vadd.f32 1.0, %v112_v15 }
  0x3f   :  { %113 = vrcp.f32 %v76_v16 }
  0x40   :  { %115 = vrcp.f32 %v77_v17 }
  0x49   :  { %v114_v20 = vpop.eup %113 }
  0x4a   :  { %v116_v21 = vpop.eup %115  ;;  %v80_v22 = vmul.f32 %v114_v20, %v74_v18 }
  0x4b   :  { %v81_v23 = vmul.f32 %v116_v21, %v75_v19 }
  0x4c   :  { %v82_v24 = vmax.f32 %v80_v22, 0.05 }
  0x4d   :  { %v83_v25 = vmax.f32 %v81_v23, 0.05 }
  0x4f   :  { %v84_v26 = vadd.f32 %v83_v25, %v82_v24 }
  0x51   :  { %86 = vst [vmem:[#allocation7] sm:$0xff] %v84_v26 }
  0x52   :  { %172 = shalt.err (!%p169_p6)
}
  0x53   :  { %s173_s10 = scalar_lea.hbm %s247_s2, 128 }
  0x54   :  { %p174_p7 = scmp.ne.s32.totalorder %s247_s2, %s173_s10  ;;  %p177_p8 = scmp.lt.u32.totalorder %s173_s10, %s247_s2 }
  0x56   :  { %p179_p9 = pnand %p177_p8, %p174_p7 }
  0x58   :  { %182 = shalt.err (!%p179_p9)
}
  0x59   :  { %96 = dma.vmem_to_hbm [thread:$0]  %s94_s6, 128, %s247_s2, [#allocation4]  }
  0x5a   :  { %187 = dma.done.wait [#allocation4], 128  }
  0x5b   :  { %188 = vsyncadd [#allocation4], 4294967168 }
  0x5c   :  { %100 = vsyncpa [#allocation3], 1 }
  0x5d   :  { %101 = vsyncpa [#allocation6], 1 }
  0x5e   :  { %102 = vsyncpa [#allocation4], 1 }

</bundles_post_ra>
